<compile_context>
chip_gen: v7x
topology: tpu7x:2x2x1
jax: 0.10.0
libtpu: 0.0.40
codegen_flags: <defaults>
</compile_context>

<pallas_src>
import jax
import jax.numpy as jnp
from jax.experimental import pallas as pl
from jax.experimental.pallas import tpu as pltpu


def edge_decoder_kernel(x_ref, w1_ref, b1_ref, w2_ref, b2_ref, o_ref):
    # x_ref: (C_in, tile_e)  -- already gathered & multiplied edge features.
    # TODO(synk): nn.Dropout(0.5) is identity in eval mode; training-time RNG mask omitted.
    x = x_ref[...]
    # First Linear (weights passed as (hidden, C_in) == PyTorch layout).
    h = jnp.dot(w1_ref[...], x, preferred_element_type=jnp.float32) + b1_ref[...]
    # ELU (alpha = 1).  Clamp the argument so exp never produces inf; the clamped
    # exp(h) - 1 matches expm1 to ~1 ulp in absolute terms (exp is guaranteed to
    # lower on every TPU generation, expm1 lowering is not).
    h = jnp.where(h > 0, h, jnp.exp(jnp.minimum(h, 0.0)) - 1.0)
    # Second Linear.
    o = jnp.dot(w2_ref[...], h, preferred_element_type=jnp.float32) + b2_ref[...]
    o_ref[...] = o.astype(o_ref.dtype)


def _round_up(x, m):
    return (x + m - 1) // m * m


def edge_decoder(z, edge, w1, b1, w2, b2, *, tile_e=512):
    """Pallas EdgeDecoder forward.

    z: (N, C_in) f32, edge: (2, E) int32,
    w1: (C_in, H), b1: (H,), w2: (H, C_out), b2: (C_out,).
    Returns (E, C_out), matching the PyTorch module.
    """
    _, c_in = z.shape
    hidden = w1.shape[1]
    c_out = w2.shape[1]
    E = edge.shape[1]

    # ---- host-side glue: gather endpoints & multiply, emitted feature-major ----
    # Writing the product once as (C_in, E) (instead of a, b as 2x(E, C_in)) halves
    # the HBM round-trip and gives the kernel lane-dense tiles.
    # TODO(synk): a fully in-kernel gather (scalar-prefetched edge ids + dynamic
    # gather from a VMEM-resident z) would remove this intermediate entirely.
    zT = z.T                                          # (C_in, N) -- tiny transpose
    x_t = zT[:, edge[0]] * zT[:, edge[1]]             # (C_in, E)

    # ---- tile sizing ----
    # Lane tiles must be multiples of 128.  Clamp so small graphs are not
    # over-padded and so there are >=2 grid steps when E allows (v7x: 2 TCs).
    tile_e = max(128, _round_up(tile_e, 128))
    tile_e = min(tile_e, max(128, _round_up(pl.cdiv(E, 2), 128)))
    E_pad = _round_up(E, tile_e)
    if E_pad != E:
        x_t = jnp.pad(x_t, ((0, 0), (0, E_pad - E)))

    grid = (E_pad // tile_e,)

    # Parameters in (out_features, in_features) layout, biases as column vectors.
    w1_t = w1.T                                       # (H, C_in)
    w2_t = w2.T                                       # (C_out, H)
    b1_c = b1.reshape(hidden, 1)
    b2_c = b2.reshape(c_out, 1)

    out_t = pl.pallas_call(
        edge_decoder_kernel,
        out_shape=jax.ShapeDtypeStruct((c_out, E_pad), z.dtype),
        grid_spec=pltpu.PrefetchScalarGridSpec(
            num_scalar_prefetch=0,
            grid=grid,
            in_specs=[
                pl.BlockSpec((c_in, tile_e), lambda i: (0, i)),    # x tile (lane-dense)
                pl.BlockSpec((hidden, c_in), lambda i: (0, 0)),    # W1^T (whole, fetched once)
                pl.BlockSpec((hidden, 1), lambda i: (0, 0)),       # b1
                pl.BlockSpec((c_out, hidden), lambda i: (0, 0)),   # W2^T (whole, fetched once)
                pl.BlockSpec((c_out, 1), lambda i: (0, 0)),        # b2
            ],
            out_specs=pl.BlockSpec((c_out, tile_e), lambda i: (0, i)),
        ),
        compiler_params=pltpu.CompilerParams(
            # Edge-tile axis is embarrassingly parallel -> shards across v7x's 2 TCs.
            dimension_semantics=("parallel",),
            # Blocks are small (<= a few MiB even at tile_e=4096); 32 MiB safely
            # covers every generation's scoped-VMEM default (v5e default is 16 MiB).
            vmem_limit_bytes=32 * 1024 * 1024,
        ),
    )(x_t, w1_t, b1_c, w2_t, b2_c)

    # Strip padding and return in the module's (E, C_out) orientation (tiny op).
    return out_t[:, :E].T


def edge_decoder_ref(z, edge, w1, b1, w2, b2):
    x = z[edge[0]] * z[edge[1]]
    h = x @ w1 + b1
    h = jax.nn.elu(h)
    return h @ w2 + b2


if __name__ == "__main__":
    # Small deterministic example shapes; E is NOT a multiple of the tile so the
    # padding path and a 2-step parallel grid are both exercised.
    N = 64           # number of nodes
    C_IN = 32        # in_channels
    HIDDEN = 32      # hidden_channels
    C_OUT = 8        # out_channels
    E = 640          # number of edges

    key = jax.random.PRNGKey(0)
    kz, ke, kw1, kb1, kw2, kb2 = jax.random.split(key, 6)

    z = jax.random.normal(kz, (N, C_IN), dtype=jnp.float32)
    edge = jax.random.randint(ke, (2, E), 0, N, dtype=jnp.int32)

    # Deterministic parameter init (nn.Linear-like uniform bounds).
    bound1 = 1.0 / jnp.sqrt(C_IN)
    w1 = jax.random.uniform(kw1, (C_IN, HIDDEN), jnp.float32, -bound1, bound1)
    b1 = jax.random.uniform(kb1, (HIDDEN,), jnp.float32, -bound1, bound1)
    bound2 = 1.0 / jnp.sqrt(HIDDEN)
    w2 = jax.random.uniform(kw2, (HIDDEN, C_OUT), jnp.float32, -bound2, bound2)
    b2 = jax.random.uniform(kb2, (C_OUT,), jnp.float32, -bound2, bound2)

    out = edge_decoder(z, edge, w1, b1, w2, b2, tile_e=512)
    out = jax.block_until_ready(out)

    ref = edge_decoder_ref(z, edge, w1, b1, w2, b2)
    assert out.shape == (E, C_OUT), out.shape
    assert jnp.allclose(out, ref, atol=1e-4, rtol=1e-4), float(jnp.max(jnp.abs(out - ref)))

    print("KERNEL_OK")
</pallas_src>

<mosaic_0001>
module attributes {stable_mosaic.version = 11 : i64} {
  func.func @edge_decoder_kernel(%arg0: i32, %arg1: memref<32x384xf32, #tpu.memory_space<vmem>>, %arg2: memref<32x32xf32, #tpu.memory_space<vmem>>, %arg3: memref<32x1xf32, #tpu.memory_space<vmem>>, %arg4: memref<8x32xf32, #tpu.memory_space<vmem>>, %arg5: memref<8x1xf32, #tpu.memory_space<vmem>>, %arg6: memref<8x384xf32, #tpu.memory_space<vmem>>) attributes {dimension_semantics = [#tpu.dimension_semantics<parallel>], iteration_bounds = array<i64: 2>, scalar_prefetch = 0 : i64, scratch_operands = 0 : i64, tpu.core_type = #tpu.core_type<tc>, window_params = [{transform_indices = @transform_0, window_bounds = array<i64: 32, 384>}, {pipeline_mode = #tpu.pipeline_mode<synchronous>, transform_indices = @transform_1, window_bounds = array<i64: 32, 32>}, {pipeline_mode = #tpu.pipeline_mode<synchronous>, transform_indices = @transform_2, window_bounds = array<i64: 32, 1>}, {pipeline_mode = #tpu.pipeline_mode<synchronous>, transform_indices = @transform_3, window_bounds = array<i64: 8, 32>}, {pipeline_mode = #tpu.pipeline_mode<synchronous>, transform_indices = @transform_4, window_bounds = array<i64: 8, 1>}, {transform_indices = @transform_5, window_bounds = array<i64: 8, 384>}]} {
    %c0 = arith.constant 0 : index
    %c0_0 = arith.constant 0 : index
    %0 = vector.load %arg1[%c0, %c0_0] : memref<32x384xf32, #tpu.memory_space<vmem>>, vector<32x384xf32>
    %c0_1 = arith.constant 0 : index
    %c0_2 = arith.constant 0 : index
    %1 = vector.load %arg2[%c0_1, %c0_2] : memref<32x32xf32, #tpu.memory_space<vmem>>, vector<32x32xf32>
    %cst = arith.constant dense<0.000000e+00> : vector<32x384xf32>
    %2 = tpu.matmul %1, %0, %cst {dimension_numbers = #tpu.dot_dimension_numbers<[1], [0], [0], [1], [0, 0, 1, 1], [], []>} : vector<32x32xf32>, vector<32x384xf32>, vector<32x384xf32> -> vector<32x384xf32>
    %c0_3 = arith.constant 0 : index
    %c0_4 = arith.constant 0 : index
    %3 = vector.load %arg3[%c0_3, %c0_4] : memref<32x1xf32, #tpu.memory_space<vmem>>, vector<32x1xf32>
    %4 = vector.broadcast %3 : vector<32x1xf32> to vector<32x384xf32>
    %5 = arith.addf %2, %4 : vector<32x384xf32>
    %cst_5 = arith.constant 0.000000e+00 : f32
    %6 = vector.broadcast %cst_5 : f32 to vector<32x384xf32>
    %7 = arith.cmpf ogt, %5, %6 : vector<32x384xf32>
    %cst_6 = arith.constant 0.000000e+00 : f32
    %8 = vector.broadcast %cst_6 : f32 to vector<32x384xf32>
    %9 = arith.minimumf %5, %8 : vector<32x384xf32>
    %10 = math.exp %9 : vector<32x384xf32>
    %cst_7 = arith.constant 1.000000e+00 : f32
    %11 = vector.broadcast %cst_7 : f32 to vector<32x384xf32>
    %12 = arith.subf %10, %11 : vector<32x384xf32>
    %13 = arith.select %7, %5, %12 : vector<32x384xi1>, vector<32x384xf32>
    %c0_8 = arith.constant 0 : index
    %c0_9 = arith.constant 0 : index
    %14 = vector.load %arg4[%c0_8, %c0_9] : memref<8x32xf32, #tpu.memory_space<vmem>>, vector<8x32xf32>
    %cst_10 = arith.constant dense<0.000000e+00> : vector<8x384xf32>
    %15 = tpu.matmul %14, %13, %cst_10 {dimension_numbers = #tpu.dot_dimension_numbers<[1], [0], [0], [1], [0, 0, 1, 1], [], []>} : vector<8x32xf32>, vector<32x384xf32>, vector<8x384xf32> -> vector<8x384xf32>
    %c0_11 = arith.constant 0 : index
    %c0_12 = arith.constant 0 : index
    %16 = vector.load %arg5[%c0_11, %c0_12] : memref<8x1xf32, #tpu.memory_space<vmem>>, vector<8x1xf32>
    %17 = vector.broadcast %16 : vector<8x1xf32> to vector<8x384xf32>
    %18 = arith.addf %15, %17 : vector<8x384xf32>
    %c0_13 = arith.constant 0 : index
    %c0_14 = arith.constant 0 : index
    %19 = vector.load %arg6[%c0_13, %c0_14] : memref<8x384xf32, #tpu.memory_space<vmem>>, vector<8x384xf32>
    tpu.vector_store %arg6[%c0_13, %c0_14], %18 {strides = array<i32>} : memref<8x384xf32, #tpu.memory_space<vmem>>, vector<8x384xf32>,
    return
  }
  func.func @transform_0(%arg0: i32) -> (i32, i32) {
    %c0_i32 = arith.constant 0 : i32
    %c0_i32_0 = arith.constant 0 : i32
    return %c0_i32, %arg0 : i32, i32
  }
  func.func @transform_1(%arg0: i32) -> (i32, i32) {
    %c0_i32 = arith.constant 0 : i32
    %c0_i32_0 = arith.constant 0 : i32
    %c0_i32_1 = arith.constant 0 : i32
    return %c0_i32, %c0_i32_0 : i32, i32
  }
  func.func @transform_2(%arg0: i32) -> (i32, i32) {
    %c0_i32 = arith.constant 0 : i32
    %c0_i32_0 = arith.constant 0 : i32
    %c0_i32_1 = arith.constant 0 : i32
    return %c0_i32, %c0_i32_0 : i32, i32
  }
  func.func @transform_3(%arg0: i32) -> (i32, i32) {
    %c0_i32 = arith.constant 0 : i32
    %c0_i32_0 = arith.constant 0 : i32
    %c0_i32_1 = arith.constant 0 : i32
    return %c0_i32, %c0_i32_0 : i32, i32
  }
  func.func @transform_4(%arg0: i32) -> (i32, i32) {
    %c0_i32 = arith.constant 0 : i32
    %c0_i32_0 = arith.constant 0 : i32
    %c0_i32_1 = arith.constant 0 : i32
    return %c0_i32, %c0_i32_0 : i32, i32
  }
  func.func @transform_5(%arg0: i32) -> (i32, i32) {
    %c0_i32 = arith.constant 0 : i32
    %c0_i32_0 = arith.constant 0 : i32
    return %c0_i32, %arg0 : i32, i32
  }
}

</mosaic_0001>

<bundles_post_ra>
// kernel: tpu_custom_call.1
= control target key start
LH: loop header
LB: loop body
LE: loop exit
PB: predicated region body
PF: predicated region fallthrough
CT: control target
= control target key end

     0   :  { %10 = vsyncpa [#allocation3], 0  ;;  %s1361_s0 = inlined_call_operand.hbm [shape: f32[32,768], index: 0, kind: input, shape index: {}]   ;;  %s1362_s1 = inlined_call_operand.vmem [shape: f32[32,32], index: 1, kind: input, shape index: {}]   ;;  %s1363_s2 = inlined_call_operand.vmem [shape: f32[32,1], index: 2, kind: input, shape index: {}]   ;;  %s1364_s3 = inlined_call_operand.vmem [shape: f32[8,32], index: 3, kind: input, shape index: {}]   ;;  %s1365_s4 = inlined_call_operand.vmem [shape: f32[8,1], index: 4, kind: input, shape index: {}]   ;;  %s1366_s5 = inlined_call_operand.hbm [shape: f32[8,768], index: 5, kind: output, shape index: {}]  }
   0x1   :  { %12 = vsyncpa [#allocation3 + $0x1], 0 }
   0x2   :  { %13 = vsyncpa [#allocation4], 0 }
   0x3   :  { %15 = vsyncpa [#allocation4 + $0x1], 0  ;;  %s1102_s18 = smov 0   ;;  %s1104_s19 = smov 0  }
   0x4   :  { %s1106_s20 = smov 0   ;;  %s1108_s21 = smov 0  }
   0x5 LB: > { %s1123_s22 = sadd.s32 4294967295, %s1061_s21   ;;  %s783_s23 = sadd.s32 4294967294, %s1061_s21   ;;  %s1061_s21 = sphi %s1108_s21, %s1379_s21   ;;  %s1057_s20 = sphi %s1106_s20, %s1378_s20   ;;  %s1053_s19 = sphi %s1104_s19, %s1377_s19   ;;  %s1049_s18 = sphi %s1102_s18, %s1376_s18  }
   0x6   : > { %s1127_s24 = sadd.s32 1, %s1061_s21   ;;  %s28_s25 = sadd.s32 1, %s1057_s20 }
   0x7   : > { %s25_s26 = ssub.s32 %s1061_s21, %s1127_s24  ;;  %p35_p0 = scmp.ne.s32.totalorder %s1057_s20, %s1053_s19 }
   0x8   : > { %p26_p1 = scmp.eq.s32.totalorder %s25_s26, 0  ;;  %p36_p2 = scmp.eq.s32.totalorder %s1061_s21, 0 }
   0x9   : > { %p41_p3 = scmp.ne.s32.totalorder %s1053_s19, %s1049_s18  ;;  %p42_p4 = scmp.eq.s32.totalorder %s1123_s22, 0 }
   0xa   : > { %s1139_s27 = scalar_select %p26_p1, %s1057_s20, %s28_s25  }
   0xb   : > { %p37_p5 = por %p36_p2, %p35_p0  ;;  %p1141_p6 = por %p42_p4, %p41_p3 }
   0xc   : > { %p149_p7 = scmp.eq.s32.totalorder %s1123_s22, 1  ;;  %p155_p8 = scmp.eq.s32.totalorder %s783_s23, 1 }
   0xd   : > { %p898_p10 = scmp.lt.s32.totalorder %s1061_s21, 2  ;;  %s187_s6 = sand.u32 1, %s1057_s20  }
   0xe   : > { %p1148_p11 = por %p149_p7, %p35_p0  ;;  %p1152_p12 = por %p155_p8, %p41_p3 }
   0xf   : > { %s813_s7 = smul.u32 384, %s1061_s21  ;;  %p1163_p13 = pnand %p898_p10, %p37_p5 }
  0x10   : > { %s1369_s29 = scalar_select %p1148_p11, 1, 0 }
  0x11   : > { %s1370_s30 = scalar_select %p1152_p12, 1, 0 }
  0x12   : > { %s883_s8 = smul.u32 96, %s187_s6  ;;  %s1161_s11 = scalar_lea.hbm %s1361_s0, %s813_s7 }
  0x13   : > { %s1170_s15 = scalar_lea.sflag [#allocation3], %s187_s6  ;;  %s965_s16 = scalar_lea.hbm %s1161_s11, 1536 }
  0x14   : > { %s191_s13 = scalar_lea.vmem [#allocation2], %s883_s8  ;;  %p966_p1 = scmp.ne.s32.totalorder %s1161_s11, %s965_s16 }
  0x15   : > { %s198_s14 = sshll.u32 %s191_s13, 4  ;;  %p967_p2 = pneg %p1163_p13  ;;  %s1167_s14 = int_to_ptr.vmem [resolvable:$true] %s198_s14 }
  0x16   : > { %s970_s25 = scalar_lea.hbm %s1361_s0, 3072  ;;  %p971_p5 = scmp.lt.u32.totalorder %s1161_s11, %s1361_s0 }
  0x17   : > { %p968_p3 = pnand %p967_p2, %p966_p1  ;;  %p972_p7 = scmp.lt.u32.totalorder %s970_s25, %s965_s16 }
  0x18   : > { %p974_p10 = scmp.lt.u32.totalorder %s965_s16, %s1161_s11 }
  0x19   : > { %p969_p4 = pneg %p968_p3  ;;  %p973_p8 = por %p972_p7, %p971_p5 }
  0x1b   : > { %p975_p9 = por %p974_p10, %p973_p8 }
  0x1d   : > { %p976_p0 = pnand %p975_p9, %p969_p4 }
  0x1f   : > { %979 = shalt.err (!%p976_p0)
}
  0x20   : > { %s980_s6 = scalar_lea.vmem %s1167_s14, 1536  ;;  %s1063_s8 = smov [#allocation2]  }
  0x21   : > { %p981_p1 = scmp.ne.s32.totalorder %s1167_s14, %s980_s6  ;;  %s985_s9 = sshll.u32 %s1063_s8, 4  ;;  %s986_s9 = int_to_ptr.vmem [resolvable:$false] %s985_s9 }
  0x22   : > { %s987_s10 = scalar_lea.vmem %s986_s9, 3072  ;;  %p988_p11 = scmp.lt.s32.totalorder %s1167_s14, %s986_s9 }
  0x23   : > { %p983_p3 = pnand %p981_p1, %p967_p2  ;;  %p989_p5 = scmp.lt.s32.totalorder %s987_s10, %s980_s6 }
  0x25   : > { %p984_p12 = pneg %p983_p3  ;;  %p990_p7 = por %p989_p5, %p988_p11 }
  0x27   : > { %p991_p8 = pnand %p990_p7, %p984_p12 }
  0x29   : > { %994 = shalt.err (!%p991_p8)
}
  0x2a   : > { %s1064_s13 = smov 768   ;;  %s1065_s16 = smov 384  }
  0x2b   : > { %s1066_s17 = smov 24   ;;  %p206_p9 = scmp.lt.s32.totalorder %s1061_s21, 3 }
  0x2c   : > { %893 = dma.hbm_to_vmem [thread:$0]  (!%p1163_p13), %s1161_s11, 1536, %s1167_s14, %s1170_s15, %s1064_s13, %s1065_s16, %s1066_s17  }
  0x2d   : > { %p1372_p0 = scmp.ge.s32.totalorder %s1061_s21, 1 }
  0x2f   : > { %p207_p2 = pnand %p1372_p0, %p206_p9 }
  0x30   : > { %s1202_s23 = sand.u32 (!%p207_p2), 1, %s1053_s19  }
  0x31   : > { %210 = sbr.rel (%p207_p2) target bundleno = 549 (0x225), region = 40  ;;  %s213_s26 = scalar_lea.sflag (!%p207_p2), [#allocation3], %s1202_s23 }
  0x32   : > { %s884_s25 = smul.u32 (!%p207_p2), 96, %s1202_s23 }
  0x34   : > { %s216_s7 = scalar_lea.vmem (!%p207_p2), [#allocation2], %s884_s25 }
  0x38   : > { %1040 = dma.done.wait (%p1141_p6), %s213_s26, 1536  }
  0x39   : > { %1042 = vsyncadd (%p1141_p6), %s213_s26, 4294965760  ;;  %v1067_v0 = vmov 0.0   ;;  %v1068_v1 = vmov 0   ;;  %v246_v2 = vld [vmem:[%s216_s7 + $0x8] sm:$0xff]  ;;  %v249_v3 = vld [vmem:[%s216_s7 + $0x20] sm:$0xff]  ;;  %vm285_vm0 = vcmask 261120  }
  0x3a   : > { %362 = vmatprep.mubr.f32.mxu0 %v1067_v0  ;;  %939 = vset.pattern.permute.xlu0 %v1068_v1  ;;  %v247_v4 = vld [vmem:[%s216_s7 + $0x10] sm:$0xff]  ;;  %v853_v5 = vpack.c.bf16 %v249_v3, %v246_v2  ;;  %v250_v6 = vld [vmem:[%s216_s7 + $0x28] sm:$0xff]  ;;  %v245_v7 = vld [vmem:[%s216_s7] sm:$0xff]  ;;  %v1069_v29 = vmov 0.0|0.0   ;;  %vm1070_vm1 = vmmov 0   ;;  %s885_s6 = smul.u32 24, %s1202_s23 }
  0x3b   : > { %940 = vset.pattern.permute.xlu1 %v1068_v1  ;;  %v248_v8 = vld [vmem:[%s216_s7 + $0x18] sm:$0xff]  ;;  %v861_v9 = vpack.c.bf16 %v250_v6, %v247_v4  ;;  %v255_v12 = vld [vmem:[%s216_s7 + $0x50] sm:$0xff]  ;;  %v253_v13 = vld [vmem:[%s216_s7 + $0x40] sm:$0xff]  ;;  %s814_s9 = smul.u32 384, %s1123_s22  ;;  %s699_s25 = scalar_lea.sflag [#allocation4], %s1202_s23 }
  0x3c   : > { %v855_v10 = vpack.c.bf16 %v248_v8, %v245_v7  ;;  %v252_v11 = vld [vmem:[%s216_s7 + $0x38] sm:$0xff]  ;;  %854 = vmatprep.subr.bf16.mxu0 %v853_v5  ;;  %v251_v16 = vld [vmem:[%s216_s7 + $0x30] sm:$0xff]  ;;  %v254_v17 = vld [vmem:[%s216_s7 + $0x48] sm:$0xff]  ;;  %s242_s8 = scalar_lea.vmem [#allocation5], %s885_s6  ;;  %p1373_p11 = scmp.ne.s32.totalorder %s1369_s29, 0 }
  0x3d   : > { %v857_v14 = vpack.c.bf16 %v255_v12, %v252_v11  ;;  %v256_v15 = vld [vmem:[%s216_s7 + $0x58] sm:$0xff]  ;;  %862 = vmatprep.subr.bf16.mxu1 %v861_v9  ;;  %v859_v19 = vpack.c.bf16 %v254_v17, %v251_v16  ;;  %v257_v20 = vld [vmem:[%s1362_s1] sm:$0xff]  ;;  %v263_v22 = vld [vmem:[%s1363_s2 + $0x10] sm:$0xff]  ;;  %s713_s10 = sshll.u32 %s242_s8, 4  ;;  %s1317_s17 = scalar_lea.hbm %s1366_s5, %s814_s9  ;;  %s1319_s10 = int_to_ptr.vmem [resolvable:$true] %s713_s10 }
  0x3e   : > { %856 = vmatpush1.bf16.msra.mxu0 %v855_v10  ;;  %v865_v18 = vpack.c.bf16 %v256_v15, %v253_v13  ;;  %864 = vmatpush3.bf16.msra.mxu1 %v861_v9  ;;  %v261_v21 = vld [vmem:[%s1363_s2] sm:$0xff]  ;;  %v262_v23 = vld [vmem:[%s1363_s2 + $0x8] sm:$0xff]  ;;  %v259_v25 = vld [vmem:[%s1362_s1 + $0x10] sm:$0xff]  ;;  %s995_s26 = scalar_lea.vmem %s1319_s10, 384  ;;  %s1071_s22 = smov [#allocation5]  }
  0x3f   : > { %858 = vmatprep.subr.bf16.mxu0 %v857_v14  ;;  %836 = vmatprep.mubr.msk.f32.mxu1 %vm285_vm0, %v257_v20  ;;  %v258_v24 = vld [vmem:[%s1362_s1 + $0x8] sm:$0xff]  ;;  %v264_v26 = vld [vmem:[%s1363_s2 + $0x18] sm:$0xff]  ;;  %v545_v27 = vld [vmem:[%s1365_s4] sm:$0xff]  ;;  %p996_p6 = scmp.ne.s32.totalorder %s1319_s10, %s995_s26  ;;  %s999_s7 = sshll.u32 %s1071_s22, 4  ;;  %s1000_s7 = int_to_ptr.vmem [resolvable:$false] %s999_s7 }
  0x40   : > { %866 = vmatprep.subr.bf16.mxu1 %v865_v18  ;;  %267 = vperm.xlu0 %939, %v261_v21   ;;  %v260_v28 = vld [vmem:[%s1362_s1 + $0x18] sm:$0xff]  ;;  %s1001_s28 = scalar_lea.vmem %s1000_s7, 768  ;;  %p1002_p4 = scmp.lt.s32.totalorder %s1319_s10, %s1000_s7 }
  0x41   : > { %277 = vperm.xlu1 %940, %v263_v22   ;;  %p997_p12 = pnand %p996_p6, %p1373_p11  ;;  %p1003_p10 = scmp.lt.s32.totalorder %s1001_s28, %s995_s26 }
  0x42   : > { %860 = vmatpush1.bf16.msra.mxu0 %v859_v19  ;;  %868 = vmatpush3.bf16.msra.mxu1 %v865_v18 }
  0x43   : > { %877 = vmatprep.subr.bf16.mxu0 %v1069_v29  ;;  %p998_p13 = pneg %p997_p12  ;;  %p1004_p1 = por %p1003_p10, %p1002_p4 }
  0x44   : > { %272 = vperm.xlu0 %939, %v262_v23  }
  0x45   : > { %788 = vmatmul.mubr.msk.f32.vlgmr.msra.gmra.mrb[0].mxu0 %vm285_vm0, %v257_v20  ;;  %837 = vmatmul.mubr.msk.f32.vlgmr.msra.gmra.mrb[0].mxu1 %vm285_vm0, %v258_v24  ;;  %p1005_p3 = pnand %p1004_p1, %p998_p13 }
  0x46   : > { %368 = vmatprep.mubr.f32.mxu0 %v1067_v0  ;;  %839 = vmatprep.mubr.msk.f32.mxu1 %vm285_vm0, %v259_v25 }
  0x47   : > { %282 = vperm.xlu1 %940, %v264_v26  }
  0x48   : > { %548 = vperm.xlu0 %939, %v545_v27  }
  0x49   : > { %789 = vmatmul.mubr.msk.f32.gmra.mrb[2].mxu0 %vm285_vm0, %v258_v24  ;;  %840 = vmatmul.mubr.msk.f32.gmra.mrb[2].mxu1 %vm285_vm0, %v260_v28 }
  0x4a   : > { %374 = vmatprep.mubr.f32.mxu0 %v1067_v0  ;;  %618 = vmatprep.mubr.f32.mxu1 %v1067_v0 }
  0x4d   : > { %790 = vmatmul.mubr.msk.f32.gmra.mrb[4].mxu0 %vm285_vm0, %v259_v25 }
  0x4e   : > { %380 = vmatprep.mubr.f32.mxu0 %v1067_v0 }
  0x51   : > { %791 = vmatmul.mubr.msk.f32.gmra.mrb[6].mxu0 %vm285_vm0, %v260_v28 }
  0x52   : > { %850 = vmatprep.mubr.msk.f32.mxu0 %vm1070_vm1, %v1067_v0 }
  0xbf   : > { %v268_v30 = vpop.permute.xlu0 %267 }
  0xc0   : > { %v278_v31 = vpop.permute.xlu1 %277 }
  0xc3   : > { %v273_v32 = vpop.permute.xlu0 %272 }
  0xc6   : > { %v283_v42 = vpop.permute.xlu1 %282 }
 0x118   : > { %v364_v33 = vpop.f32.mrb[0].mxu0  ;;  %v838_v35 = vpop.f32.mrb[0].mxu1 }
 0x119   : > { %v1246_v34 = vadd.f32 %v364_v33, %v268_v30  ;;  %v366_v36 = vpop.f32.mrb[1].mxu0  ;;  %v1248_v37 = vadd.f32 %v838_v35, %v273_v32  ;;  %v453_v39 = vpop.f32.mrb[1].mxu1 }
 0x11a   : > { %v1250_v38 = vadd.f32 %v366_v36, %v268_v30  ;;  %v1253_v41 = vadd.f32 %v453_v39, %v268_v30 }
 0x11b   : > { %v484_v40 = vmin.f32 %v1246_v34, 0.0  ;;  %v489_v43 = vmin.f32 %v1248_v37, 0.0  ;;  %vm477_vm2 = vcmp.gt.f32.partialorder %v1248_v37, 0.0  ;;  %vm472_vm4 = vcmp.gt.f32.partialorder %v1246_v34, 0.0 }
 0x11c   : > { %v485_v44 = vmin.f32 %v1250_v38, 0.0  ;;  %v370_v45 = vpop.f32.mrb[2].mxu0  ;;  %v486_v47 = vmin.f32 %v1253_v41, 0.0  ;;  %v841_v49 = vpop.f32.mrb[2].mxu1  ;;  %vm474_vm3 = vcmp.gt.f32.partialorder %v1253_v41, 0.0  ;;  %vm473_vm6 = vcmp.gt.f32.partialorder %v1250_v38, 0.0 }
 0x11d   : > { %v496_v46 = vmul.f32 1.442695, %v484_v40  ;;  %v1258_v48 = vadd.f32 %v370_v45, %v273_v32  ;;  %v372_v50 = vpop.f32.mrb[3].mxu0  ;;  %v506_v51 = vmul.f32 1.442695, %v489_v43  ;;  %v1260_v53 = vadd.f32 %v841_v49, %v283_v42  ;;  %v463_v55 = vpop.f32.mrb[3].mxu1 }
 0x11e   : > { %v498_v52 = vmul.f32 1.442695, %v485_v44  ;;  %v1262_v54 = vadd.f32 %v372_v50, %v273_v32  ;;  %v500_v56 = vmul.f32 1.442695, %v486_v47  ;;  %v1267_v62 = vadd.f32 %v463_v55, %v278_v31 }
 0x11f   : > { %941 = vpow2.f32 %v496_v46  ;;  %v487_v57 = vmin.f32 %v1258_v48, 0.0  ;;  %v495_v58 = vmin.f32 %v1260_v53, 0.0  ;;  %vm475_vm5 = vcmp.gt.f32.partialorder %v1258_v48, 0.0 }
 0x120   : > { %943 = vpow2.f32 %v506_v51  ;;  %v376_v59 = vpop.f32.mrb[4].mxu0  ;;  %v488_v61 = vmin.f32 %v1262_v54, 0.0  ;;  %v492_v4 = vmin.f32 %v1267_v62, 0.0  ;;  %vm483_vm7 = vcmp.gt.f32.partialorder %v1260_v53, 0.0 }
 0x121   : > { %945 = vpow2.f32 %v498_v52  ;;  %v502_v60 = vmul.f32 1.442695, %v487_v57  ;;  %v378_v63 = vpop.f32.mrb[5].mxu0  ;;  %v518_v0 = vmul.f32 1.442695, %v495_v58  ;;  %v1269_v1 = vadd.f32 %v376_v59, %v278_v31 }
 0x122   : > { %947 = vpow2.f32 %v500_v56  ;;  %v1271_v2 = vadd.f32 %v378_v63, %v278_v31  ;;  %v504_v3 = vmul.f32 1.442695, %v488_v61  ;;  %v512_v7 = vmul.f32 1.442695, %v492_v4  ;;  %v549_v61 = vpop.permute.xlu0 %548 }
 0x123   : > { %949 = vpow2.f32 %v502_v60  ;;  %v490_v5 = vmin.f32 %v1269_v1, 0.0  ;;  %vm476_vm8 = vcmp.gt.f32.partialorder %v1262_v54, 0.0  ;;  %vm480_vm9 = vcmp.gt.f32.partialorder %v1267_v62, 0.0 }
 0x124   : > { %951 = vpow2.f32 %v518_v0  ;;  %v382_v6 = vpop.f32.mrb[6].mxu0  ;;  %v491_v8 = vmin.f32 %v1271_v2, 0.0  ;;  %vm478_vm10 = vcmp.gt.f32.partialorder %v1269_v1, 0.0  ;;  %vm479_vm12 = vcmp.gt.f32.partialorder %v1271_v2, 0.0 }
 0x125   : > { %953 = vpow2.f32 %v504_v3  ;;  %v1276_v9 = vadd.f32 %v382_v6, %v283_v42  ;;  %v384_v10 = vpop.f32.mrb[7].mxu0  ;;  %v508_v11 = vmul.f32 1.442695, %v490_v5 }
 0x126   : > { %v1278_v12 = vadd.f32 %v384_v10, %v283_v42  ;;  %955 = vpow2.f32 %v512_v7  ;;  %v510_v13 = vmul.f32 1.442695, %v491_v8 }
 0x127   : > { %v493_v14 = vmin.f32 %v1276_v9, 0.0  ;;  %957 = vpow2.f32 %v508_v11  ;;  %vm481_vm11 = vcmp.gt.f32.partialorder %v1276_v9, 0.0 }
 0x128   : > { %v494_v15 = vmin.f32 %v1278_v12, 0.0  ;;  %959 = vpow2.f32 %v510_v13  ;;  %vm482_vm13 = vcmp.gt.f32.partialorder %v1278_v12, 0.0 }
 0x129   : > { %v942_v16 = vpop.eup %941  ;;  %v514_v17 = vmul.f32 1.442695, %v493_v14 }
 0x12a   : > { %v944_v18 = vpop.eup %943  ;;  %v516_v19 = vmul.f32 1.442695, %v494_v15  ;;  %v796_v23 = vadd.f32 -1.0, %v942_v16 }
 0x12b   : > { %v946_v20 = vpop.eup %945  ;;  %v801_v21 = vadd.f32 -1.0, %v944_v18  ;;  %961 = vpow2.f32 %v514_v17 }
 0x12c   : > { %v948_v22 = vpop.eup %947  ;;  %963 = vpow2.f32 %v516_v19  ;;  %v797_v28 = vadd.f32 -1.0, %v946_v20  ;;  %v532_v35 = vsel %vm472_vm4, %v1246_v34, %v796_v23 }
 0x12d   : > { %v950_v24 = vpop.eup %949  ;;  %v537_v25 = vsel %vm477_vm2, %v1248_v37, %v801_v21  ;;  %v798_v26 = vadd.f32 -1.0, %v948_v22 }
 0x12e   : > { %v952_v27 = vpop.eup %951  ;;  %v799_v30 = vadd.f32 -1.0, %v950_v24  ;;  %v533_v45 = vsel %vm473_vm6, %v1250_v38, %v797_v28 }
 0x12f   : > { %v954_v31 = vpop.eup %953  ;;  %v534_v32 = vsel %vm474_vm3, %v1253_v41, %v798_v26  ;;  %v807_v33 = vadd.f32 -1.0, %v952_v27 }
 0x130   : > { %v878_v36 = vpack.c.bf16 %v537_v25, %v534_v32  ;;  %v535_v39 = vsel %vm475_vm5, %v1258_v48, %v799_v30  ;;  %v800_v37 = vadd.f32 -1.0, %v954_v31  ;;  %v956_v40 = vpop.eup %955 }
 0x131   : > { %v871_v42 = vpack.c.bf16 %v535_v39, %v532_v35  ;;  %v958_v43 = vpop.eup %957  ;;  %v543_v41 = vsel %vm483_vm7, %v1260_v53, %v807_v33  ;;  %v804_v44 = vadd.f32 -1.0, %v956_v40 }
 0x132   : > { %879 = vmatpush3.bf16.msra.mxu0 %v878_v36  ;;  %v536_v34 = vsel %vm476_vm8, %v1262_v54, %v800_v37  ;;  %v960_v46 = vpop.eup %959  ;;  %v802_v49 = vadd.f32 -1.0, %v958_v43 }
 0x133   : > { %880 = vmatprep.subr.bf16.mxu0 %v1069_v29  ;;  %v869_v47 = vpack.c.bf16 %v536_v34, %v533_v45  ;;  %v540_v48 = vsel %vm480_vm9, %v1267_v62, %v804_v44  ;;  %v803_v52 = vadd.f32 -1.0, %v960_v46  ;;  %v544_v29 = vld [vmem:[%s1364_s3] sm:$0xff] }
 0x134   : > { %v881_v51 = vpack.c.bf16 %v543_v41, %v540_v48  ;;  %v538_v54 = vsel %vm478_vm10, %v1269_v1, %v802_v49 }
 0x135   : > { %v962_v50 = vpop.eup %961  ;;  %870 = vmatprep.subr.bf16.mxu1 %v869_v47  ;;  %v539_v58 = vsel %vm479_vm12, %v1271_v2, %v803_v52 }
 0x136   : > { %v964_v53 = vpop.eup %963  ;;  %v805_v55 = vadd.f32 -1.0, %v962_v50  ;;  %872 = vmatpush1.bf16.msra.mxu1 %v871_v42  ;;  %882 = vmatpush3.bf16.msra.mxu0 %v881_v51 }
 0x137   : > { %v806_v38 = vadd.f32 -1.0, %v964_v53 }
 0x138   : > { %v541_v56 = vsel %vm481_vm11, %v1276_v9, %v805_v55 }
 0x139   : > { %v875_v57 = vpack.c.bf16 %v541_v56, %v538_v54  ;;  %v542_v59 = vsel %vm482_vm13, %v1278_v12, %v806_v38  ;;  %851 = vmatmul.mubr.msk.f32.vlgmr.msra.gmra.mrb[8].mxu0 %vm285_vm0, %v544_v29 }
 0x13a   : > { %v873_v60 = vpack.c.bf16 %v542_v59, %v539_v58 }
 0x13c   : > { %874 = vmatprep.subr.bf16.mxu1 %v873_v60 }
 0x13d   : > { %876 = vmatpush1.bf16.msra.mxu1 %v875_v57 }
 0x140   : > { %808 = vmatmul.mubr.msk.f32.vlgmr.msra.gmra.mrb[4].mxu1 %vm285_vm0, %v544_v29 }
 0x20c   : > { %v691_v62 = vpop.f32.mrb[8].mxu0 }
 0x20d   : > { %v692_v63 = vadd.f32 %v691_v62, %v549_v61  ;;  %v852_v0 = vpop.f32.mrb[9].mxu0 }
 0x20f   : > { %697 = vst [vmem:[%s242_s8 + $0x10] sm:$0xff] %v692_v63 }
 0x213   : > { %v620_v1 = vpop.f32.mrb[4].mxu1 }
 0x214   : > { %v621_v2 = vadd.f32 %v620_v1, %v549_v61  ;;  %v622_v3 = vpop.f32.mrb[5].mxu1 }
 0x215   : > { %v623_v4 = vadd.f32 %v622_v3, %v549_v61 }
 0x216   : > { %695 = vst [vmem:[%s242_s8] sm:$0xff] %v621_v2 }
 0x217   : > { %696 = vst [vmem:[%s242_s8 + $0x8] sm:$0xff] %v623_v4 }
 0x218   : > { %1008 = shalt.err (!%p1005_p3)
}
 0x219   : > { %s1009_s23 = scalar_lea.hbm %s1317_s17, 384  ;;  %s1013_s14 = scalar_lea.hbm %s1366_s5, 768 }
 0x21a   : > { %p1010_p5 = scmp.ne.s32.totalorder %s1317_s17, %s1009_s23  ;;  %p1014_p9 = scmp.lt.u32.totalorder %s1317_s17, %s1366_s5 }
 0x21b   : > { %p1015_p0 = scmp.lt.u32.totalorder %s1013_s14, %s1009_s23  ;;  %p1017_p6 = scmp.lt.u32.totalorder %s1009_s23, %s1317_s17 }
 0x21c   : > { %p1011_p7 = pnand %p1010_p5, %p1373_p11 }
 0x21d   : > { %p1016_p2 = por %p1015_p0, %p1014_p9 }
 0x21e   : > { %p1012_p8 = pneg %p1011_p7 }
 0x21f   : > { %p1018_p12 = por %p1017_p6, %p1016_p2 }
 0x221   : > { %p1019_p13 = pnand %p1018_p12, %p1012_p8 }
 0x223   : > { %1022 = shalt.err (!%p1019_p13)
}
 0x224   : > { %888 = dma.vmem_to_hbm [thread:$0]  (%p1373_p11), %s1319_s10, 384, %s1317_s17, %s699_s25  }
 0x225 PF: > { %s725_s8 = sand.u32 1, %s1049_s18   ;;  %p1374_p4 = scmp.ne.s32.totalorder %s1370_s30, 0 }
 0x226   : > { %p1375_p10 = scmp.ge.s32.totalorder %s1061_s21, 2  ;;  %s726_s9 = scalar_lea.sflag [#allocation4], %s725_s8 }
 0x228   : > { %p895_p1 = pnand %p1375_p10, %p1374_p4 }
 0x22a   : > { %1044 = dma.done.wait (!%p895_p1), %s726_s9, 384  }
 0x22b   : > { %1046 = vsyncadd (!%p895_p1), %s726_s9, 4294966912  ;;  %p18_p3 = scmp.ge.s32.totalorder %s1127_s24, 4   ;;  %s1376_s18 = smov %s1053_s19 }
 0x22c   : > { %s1377_s19 = smov %s1057_s20  ;;  %s1378_s20 = smov %s1139_s27 }
 0x22d   : > { %s1379_s21 = smov %s1127_s24  ;;  %20 = sbr.rel (!%p18_p3) target bundleno = 5 (0x5), region = 85 }
 0x234   :  { %731 = vsyncpa [#allocation3], 1 }
 0x235   :  { %733 = vsyncpa [#allocation3 + $0x1], 1 }
 0x236   :  { %734 = vsyncpa [#allocation4], 1 }
 0x237   :  { %736 = vsyncpa [#allocation4 + $0x1], 1 }

</bundles_post_ra>
